<compile_context>
chip_gen: v5e
topology: v5e:2x2
jax: 0.10.0
libtpu: 0.0.40
codegen_flags: <defaults>
</compile_context>

<pallas_src>
import functools

import jax
import jax.numpy as jnp
from jax.experimental import pallas as pl
from jax.experimental.pallas import tpu as pltpu


_VMEM_LIMIT = 32 * 1024 * 1024  # explicit: v5e's scoped default is only 16 MiB


def _round_up(x, m):
    return ((x + m - 1) // m) * m


def _pick_tile(size, max_tile, granule):
    """Largest multiple of `granule` that divides `size` and is <= max_tile.

    `size` must already be a multiple of `granule`.
    """
    if size <= max_tile:
        return size
    best = granule
    for t in range(granule, max_tile + 1, granule):
        if size % t == 0:
            best = t
    return best


# ---------------------------------------------------------------------------
# Kernels
# ---------------------------------------------------------------------------

def _dense_act_kernel(x_ref, w_ref, b_ref, o_ref, *, activation, leaky_slope):
    """o[i,j] = act(sum_k x[i,k] @ w[k,j] + b[j]).

    o_ref (f32, same (i, j) block across k) is the resident accumulator.
    """
    k = pl.program_id(2)

    @pl.when(k == 0)
    def _():
        o_ref[...] = jnp.zeros_like(o_ref)

    # (tm, tk) @ (tk, tn) on the MXU, f32 accumulation.  W arrives already
    # transposed/padded to (K, N), so there is no in-kernel transpose.
    # If profiling shows exposed DMA on the weight stream, add
    # pipeline_mode=pl.Buffered(3) to the W BlockSpec in the wrapper.
    o_ref[...] += jnp.dot(x_ref[...], w_ref[...],
                          preferred_element_type=jnp.float32)

    @pl.when(k == pl.num_programs(2) - 1)
    def _():
        s = o_ref[...] + b_ref[...]  # broadcast (1, tn) bias over rows
        if activation == "sigmoid":
            out = pl.reciprocal(1.0 + jnp.exp(-s))  # exact recip: 1e-5 tol
        elif activation == "tanh":
            out = jnp.tanh(s)
        elif activation == "relu":
            out = jnp.maximum(s, 0.0)
        elif activation == "leaky_relu":
            out = jnp.where(s >= 0.0, s, leaky_slope * s)
        elif activation == "none":
            out = s
        else:
            raise ValueError(f"Activation function {activation} not found")
        o_ref[...] = out


def _softmax_over_batch_kernel(s_ref, o_ref, *, valid_rows):
    """Column softmax (softmax over axis 0 == batch) on precomputed logits."""
    s = s_ref[...]
    rows = jax.lax.broadcasted_iota(jnp.int32, s.shape, 0)
    s = jnp.where(rows < valid_rows, s, -jnp.inf)  # mask padded rows
    m = jnp.max(s, axis=0, keepdims=True)
    e = jnp.exp(s - m)
    o_ref[...] = e * pl.reciprocal(jnp.sum(e, axis=0, keepdims=True))


# ---------------------------------------------------------------------------
# Wrapper
# ---------------------------------------------------------------------------

class PallasCustomLayer:
    """CustomLayer.forward (2-D input branch) on TPU via Pallas.

    Weights are transposed to (K, N) and padded to tile multiples ONCE at
    construction time so repeated forward calls don't re-pay the transpose/pad
    HBM traffic.
    """

    def __init__(self, weights, biases, activation="sigmoid",
                 leaky_slope=0.01, softmax_dim=0):
        N, K = weights.shape
        assert biases.shape == (N,)
        self.N, self.K = N, K
        self.activation = activation
        self.leaky_slope = float(leaky_slope)
        self.softmax_dim = softmax_dim

        # ---- tile selection (K / N fixed per layer; M chosen per call) -----
        # N: pad to a lane-dense 128 multiple (unmasked vst), tiles up to 512.
        Np = _round_up(N, 128)
        tn = _pick_tile(Np, 512, 128)
        # K: skip padding for small / unaligned K by using a full-extent block
        # (block dim == full array dim is allowed); otherwise 128-aligned
        # tiles up to 1024 so the contraction is wide and grid steps are few.
        if K % 128 == 0:
            Kp = K
            tk = _pick_tile(Kp, 1024, 128)
        elif K <= 1024:
            Kp = K
            tk = K
        else:
            Kp = _round_up(K, 128)
            tk = _pick_tile(Kp, 1024, 128)
        self.Np, self.tn, self.Kp, self.tk = Np, tn, Kp, tk

        # ---- cached padded / pre-transposed parameters ----------------------
        w_kn = jnp.asarray(weights, jnp.float32).T  # (K, N), MXU-ready
        if (Kp, Np) != (K, N):
            w_kn = jnp.pad(w_kn, ((0, Kp - K), (0, Np - N)))
        b = jnp.asarray(biases, jnp.float32)
        if Np != N:
            b = jnp.pad(b, (0, Np - N))
        self.w_kn = w_kn
        self.b_row = b.reshape(1, Np)

    def __call__(self, x):
        # TODO(synk): the >2-D input branch of the module
        # (torch.matmul(inputs, W) without transpose) is not implemented.
        assert x.ndim == 2, "only the 2-D input branch is implemented"
        B, K = x.shape
        assert K == self.K

        # M tile: as large as comfortably fits (<=512) so the 256-wide MXU on
        # v6e/v7x stays full when the batch allows it.
        tm = min(512, _round_up(B, 8))
        Bp = _round_up(B, tm)

        x_p = jnp.asarray(x, jnp.float32)
        if (Bp, self.Kp) != (B, K):
            x_p = jnp.pad(x_p, ((0, Bp - B), (0, self.Kp - K)))

        tk, tn, Kp, Np = self.tk, self.tn, self.Kp, self.Np
        matmul_act = "none" if self.activation == "softmax" else self.activation
        kernel = functools.partial(_dense_act_kernel, activation=matmul_act,
                                   leaky_slope=self.leaky_slope)

        grid = (Bp // tm, Np // tn, Kp // tk)

        out_p = pl.pallas_call(
            kernel,
            out_shape=jax.ShapeDtypeStruct((Bp, Np), jnp.float32),
            grid_spec=pltpu.PrefetchScalarGridSpec(
                num_scalar_prefetch=0,
                grid=grid,
                in_specs=[
                    pl.BlockSpec((tm, tk), lambda i, j, k: (i, k)),   # x
                    pl.BlockSpec((tk, tn), lambda i, j, k: (k, j)),   # W (K,N)
                    pl.BlockSpec((1, tn), lambda i, j, k: (0, j)),    # bias
                ],
                out_specs=pl.BlockSpec((tm, tn), lambda i, j, k: (i, j)),
            ),
            compiler_params=pltpu.CompilerParams(
                dimension_semantics=("parallel", "parallel", "arbitrary"),
                vmem_limit_bytes=_VMEM_LIMIT,
            ),
        )(x_p, self.w_kn, self.b_row)

        if self.activation == "softmax":
            if self.softmax_dim != 0:
                # TODO(synk): softmax over dims other than 0 is not implemented.
                raise NotImplementedError(
                    "softmax_dim != 0 not implemented in the Pallas path")
            # Tiny second pass: column softmax over the (Bp, Np) logits.  The
            # matmul above stays fully tiled over M (no whole-batch x-tile),
            # so VMEM use doesn't scale with B and megacore keeps M tiles.
            # TODO(synk): extremely large batches would need a two-stage
            # max/sum reduction instead of one full-column tile here.
            sm = functools.partial(_softmax_over_batch_kernel, valid_rows=B)
            out_p = pl.pallas_call(
                sm,
                out_shape=jax.ShapeDtypeStruct((Bp, Np), jnp.float32),
                grid_spec=pltpu.PrefetchScalarGridSpec(
                    num_scalar_prefetch=0,
                    grid=(Np // tn,),
                    in_specs=[pl.BlockSpec((Bp, tn), lambda j: (0, j))],
                    out_specs=pl.BlockSpec((Bp, tn), lambda j: (0, j)),
                ),
                compiler_params=pltpu.CompilerParams(
                    dimension_semantics=("parallel",),
                    vmem_limit_bytes=_VMEM_LIMIT,
                ),
            )(out_p)

        return out_p[:B, :self.N]


def reference_forward(x, weights, biases, *, activation="sigmoid",
                      leaky_slope=0.01, softmax_dim=0):
    s = x @ weights.T + biases
    if activation == "sigmoid":
        return jax.nn.sigmoid(s)
    if activation == "tanh":
        return jnp.tanh(s)
    if activation == "relu":
        return jax.nn.relu(s)
    if activation == "leaky_relu":
        return jnp.where(s >= 0, s, leaky_slope * s)
    if activation == "softmax":
        return jax.nn.softmax(s, axis=softmax_dim)
    return s


if __name__ == "__main__":
    key = jax.random.PRNGKey(0)
    k_w, k_x1, k_x2, k_w2, k_x3 = jax.random.split(key, 5)

    batch, inputs_size, neurons_size = 8, 32, 16

    # Layer.__init__ (sigmoid branch): W = randn(N,K)*sqrt(1/K), b = zeros(N).
    weights = (jax.random.normal(k_w, (neurons_size, inputs_size), jnp.float32)
               * jnp.sqrt(1.0 / inputs_size))
    biases = jnp.zeros((neurons_size,), jnp.float32)
    x = jax.random.normal(k_x1, (batch, inputs_size), jnp.float32)

    # Default activation (sigmoid).
    layer = PallasCustomLayer(weights, biases, activation="sigmoid")
    out = jax.block_until_ready(layer(x))
    ref = reference_forward(x, weights, biases, activation="sigmoid")
    assert out.shape == (batch, neurons_size)
    assert jnp.allclose(out, ref, atol=1e-5, rtol=1e-5)

    # Softmax over the batch (softmax_dim=0) with a non-multiple-of-8 batch,
    # exercising the padded-row masking in the second pass.
    x2 = jax.random.normal(k_x2, (5, inputs_size), jnp.float32)
    layer_sm = PallasCustomLayer(weights, biases, activation="softmax",
                                 softmax_dim=0)
    out_sm = jax.block_until_ready(layer_sm(x2))
    ref_sm = reference_forward(x2, weights, biases, activation="softmax")
    assert out_sm.shape == (5, neurons_size)
    assert jnp.allclose(out_sm, ref_sm, atol=1e-5, rtol=1e-5)

    # Leaky-ReLU with unaligned B/K/N to exercise full-extent-K + padded-N.
    n2, k2, b2 = 20, 48, 12
    w2 = (jax.random.normal(k_w2, (n2, k2), jnp.float32)
          * jnp.sqrt(2.0 / k2))
    bias2 = jnp.zeros((n2,), jnp.float32)
    x3 = jax.random.normal(k_x3, (b2, k2), jnp.float32)
    layer_lr = PallasCustomLayer(w2, bias2, activation="leaky_relu")
    out_lr = jax.block_until_ready(layer_lr(x3))
    ref_lr = reference_forward(x3, w2, bias2, activation="leaky_relu")
    assert out_lr.shape == (b2, n2)
    assert jnp.allclose(out_lr, ref_lr, atol=1e-5, rtol=1e-5)

    print("KERNEL_OK")
</pallas_src>

<mosaic_0001>
module attributes {stable_mosaic.version = 11 : i64} {
  func.func @_dense_act_kernel(%arg0: i32, %arg1: i32, %arg2: i32, %arg3: memref<8x32xf32, #tpu.memory_space<vmem>>, %arg4: memref<32x128xf32, #tpu.memory_space<vmem>>, %arg5: memref<1x128xf32, #tpu.memory_space<vmem>>, %arg6: memref<8x128xf32, #tpu.memory_space<vmem>>) attributes {dimension_semantics = [#tpu.dimension_semantics<parallel>, #tpu.dimension_semantics<parallel>, #tpu.dimension_semantics<arbitrary>], iteration_bounds = array<i64: 1, 1, 1>, scalar_prefetch = 0 : i64, scratch_operands = 0 : i64, tpu.core_type = #tpu.core_type<tc>, window_params = [{transform_indices = @transform_0, window_bounds = array<i64: 8, 32>}, {transform_indices = @transform_1, window_bounds = array<i64: 32, 128>}, {transform_indices = @transform_2, window_bounds = array<i64: 1, 128>}, {transform_indices = @transform_3, window_bounds = array<i64: 8, 128>}]} {
    %c0_i32 = arith.constant 0 : i32
    %0 = arith.cmpi eq, %arg2, %c0_i32 : i32
    %1 = arith.extui %0 : i1 to i32
    %c0_i32_0 = arith.constant 0 : i32
    %2 = arith.cmpi ne, %1, %c0_i32_0 : i32
    scf.if %2 {
      %cst_10 = arith.constant 0.000000e+00 : f32
      %12 = vector.broadcast %cst_10 : f32 to vector<8x128xf32>
      %c0_11 = arith.constant 0 : index
      %c0_12 = arith.constant 0 : index
      %13 = vector.load %arg6[%c0_11, %c0_12] : memref<8x128xf32, #tpu.memory_space<vmem>>, vector<8x128xf32>
      tpu.vector_store %arg6[%c0_11, %c0_12], %12 {strides = array<i32>} : memref<8x128xf32, #tpu.memory_space<vmem>>, vector<8x128xf32>,
    } else {
    }
    %c0 = arith.constant 0 : index
    %c0_1 = arith.constant 0 : index
    %3 = vector.load %arg6[%c0, %c0_1] : memref<8x128xf32, #tpu.memory_space<vmem>>, vector<8x128xf32>
    %c0_2 = arith.constant 0 : index
    %c0_3 = arith.constant 0 : index
    %4 = vector.load %arg3[%c0_2, %c0_3] : memref<8x32xf32, #tpu.memory_space<vmem>>, vector<8x32xf32>
    %c0_4 = arith.constant 0 : index
    %c0_5 = arith.constant 0 : index
    %5 = vector.load %arg4[%c0_4, %c0_5] : memref<32x128xf32, #tpu.memory_space<vmem>>, vector<32x128xf32>
    %cst = arith.constant dense<0.000000e+00> : vector<8x128xf32>
    %6 = tpu.matmul %4, %5, %cst {dimension_numbers = #tpu.dot_dimension_numbers<[1], [0], [0], [1], [0, 0, 1, 1], [], []>} : vector<8x32xf32>, vector<32x128xf32>, vector<8x128xf32> -> vector<8x128xf32>
    %7 = arith.addf %3, %6 : vector<8x128xf32>
    %c0_6 = arith.constant 0 : index
    %c0_7 = arith.constant 0 : index
    %8 = vector.load %arg6[%c0_6, %c0_7] : memref<8x128xf32, #tpu.memory_space<vmem>>, vector<8x128xf32>
    tpu.vector_store %arg6[%c0_6, %c0_7], %7 {strides = array<i32>} : memref<8x128xf32, #tpu.memory_space<vmem>>, vector<8x128xf32>,
    %c0_i32_8 = arith.constant 0 : i32
    %9 = arith.cmpi eq, %arg2, %c0_i32_8 : i32
    %10 = arith.extui %9 : i1 to i32
    %c0_i32_9 = arith.constant 0 : i32
    %11 = arith.cmpi ne, %10, %c0_i32_9 : i32
    scf.if %11 {
      %c0_10 = arith.constant 0 : index
      %c0_11 = arith.constant 0 : index
      %12 = vector.load %arg6[%c0_10, %c0_11] : memref<8x128xf32, #tpu.memory_space<vmem>>, vector<8x128xf32>
      %c0_12 = arith.constant 0 : index
      %c0_13 = arith.constant 0 : index
      %13 = vector.load %arg5[%c0_12, %c0_13] : memref<1x128xf32, #tpu.memory_space<vmem>>, vector<1x128xf32>
      %14 = vector.broadcast %13 : vector<1x128xf32> to vector<8x128xf32>
      %15 = arith.addf %12, %14 : vector<8x128xf32>
      %cst_14 = arith.constant 0.000000e+00 : f32
      %16 = vector.broadcast %cst_14 : f32 to vector<8x128xf32>
      %17 = arith.subf %16, %15 : vector<8x128xf32>
      %18 = math.exp %17 : vector<8x128xf32>
      %cst_15 = arith.constant 1.000000e+00 : f32
      %19 = vector.broadcast %cst_15 : f32 to vector<8x128xf32>
      %20 = arith.addf %19, %18 : vector<8x128xf32>
      %21 = tpu.reciprocal %20 : vector<8x128xf32> -> vector<8x128xf32>
      %c0_16 = arith.constant 0 : index
      %c0_17 = arith.constant 0 : index
      %22 = vector.load %arg6[%c0_16, %c0_17] : memref<8x128xf32, #tpu.memory_space<vmem>>, vector<8x128xf32>
      tpu.vector_store %arg6[%c0_16, %c0_17], %21 {strides = array<i32>} : memref<8x128xf32, #tpu.memory_space<vmem>>, vector<8x128xf32>,
    } else {
    }
    return
  }
  func.func @transform_0(%arg0: i32, %arg1: i32, %arg2: i32) -> (i32, i32) {
    %c0_i32 = arith.constant 0 : i32
    return %arg0, %arg2 : i32, i32
  }
  func.func @transform_1(%arg0: i32, %arg1: i32, %arg2: i32) -> (i32, i32) {
    %c0_i32 = arith.constant 0 : i32
    return %arg2, %arg1 : i32, i32
  }
  func.func @transform_2(%arg0: i32, %arg1: i32, %arg2: i32) -> (i32, i32) {
    %c0_i32 = arith.constant 0 : i32
    %c0_i32_0 = arith.constant 0 : i32
    return %c0_i32, %arg1 : i32, i32
  }
  func.func @transform_3(%arg0: i32, %arg1: i32, %arg2: i32) -> (i32, i32) {
    %c0_i32 = arith.constant 0 : i32
    return %arg0, %arg1 : i32, i32
  }
}

</mosaic_0001>

<bundles_post_ra>
// kernel: tpu_custom_call.1
= control target key start
LH: loop header
LB: loop body
LE: loop exit
PB: predicated region body
PF: predicated region fallthrough
CT: control target
= control target key end

     0   :  { %8 = vsyncpa [#allocation3], 0  ;;  %s255_s0 = inlined_call_operand.hbm [shape: f32[8,32], index: 0, kind: input, shape index: {}]   ;;  %s256_s1 = inlined_call_operand.hbm [shape: f32[32,128], index: 1, kind: input, shape index: {}]   ;;  %s257_s2 = inlined_call_operand.vmem [shape: f32[1,128], index: 2, kind: input, shape index: {}]   ;;  %s258_s3 = inlined_call_operand.hbm [shape: f32[8,128], index: 3, kind: output, shape index: {}]  }
   0x1   :  { %9 = vsyncpa [#allocation6], 0 }
   0x2   :  { %10 = vsyncpa [#allocation4], 0  ;;  %s16_s14 = sshll.u32 %s255_s0, 4  ;;  %s218_s15 = smov [#allocation2]   ;;  %s17_s14 = int_to_ptr.hbm [resolvable:$true] %s16_s14 }
   0x3   :  { %s18_s16 = sshll.u32 %s218_s15, 4  ;;  %s26_s19 = sshll.u32 %s256_s1, 4  ;;  %s19_s16 = int_to_ptr.vmem [resolvable:$true] %s18_s16  ;;  %s27_s19 = int_to_ptr.hbm [resolvable:$true] %s26_s19 }
   0x4   :  { %21 = dma.hbm_to_vmem [thread:$0]  %s17_s14, 128, %s19_s16, [#allocation3]  }
   0x5   :  { %s219_s20 = smov [#allocation5]   ;;  %s220_s22 = smov 128  }
   0x6   :  { %s28_s21 = sshll.u32 %s219_s20, 4  ;;  %s221_s23 = smov 8   ;;  %s29_s21 = int_to_ptr.vmem [resolvable:$true] %s28_s21 }
   0x7   :  { %34 = dma.hbm_to_vmem [thread:$0]  %s27_s19, 512, %s29_s21, [#allocation6], %s220_s22, %s220_s22, %s221_s23  }
   0x8   :  { %212 = dma.done.wait [#allocation3], 128  }
   0x9   :  { %213 = vsyncadd [#allocation3], 4294967168 }
   0xa   :  { %214 = dma.done.wait [#allocation6], 512  }
   0xb   :  { %215 = vsyncadd [#allocation6], 4294966784  ;;  %v55_v0 = vld [vmem:[#allocation5 + $0x18] sm:$0xff]  ;;  %v54_v1 = vld [vmem:[#allocation5 + $0x10] sm:$0xff]  ;;  %vm56_vm0 = vcmask 261120   ;;  %s222_s24 = smov [#allocation7]  }
   0xc   :  { %72 = vmatpush.msra.mxu0 %v55_v0  ;;  %v53_v2 = vld [vmem:[#allocation5 + $0x8] sm:$0xff]  ;;  %v52_v3 = vld [vmem:[#allocation5] sm:$0xff]  ;;  %v51_v4 = vld [vmem:[#allocation2] sm:$0xff]  ;;  %s115_s25 = sshll.u32 %s222_s24, 4  ;;  %s116_s25 = int_to_ptr.vmem [resolvable:$true] %s115_s25 }
   0xd   :  { %v135_v5 = vld [vmem:[%s257_s2] ss:$0 sm:$0xff]  ;;  %s117_s2 = sshll.u32 %s258_s3, 4  ;;  %s118_s2 = int_to_ptr.hbm [resolvable:$true] %s117_s2 }
   0xe   :  { %73 = vmatpush.msra.mxu0 %v54_v1 }
  0x10   :  { %74 = vmatpush.msra.mxu0 %v53_v2 }
  0x12   :  { %75 = vmatpush.msra.mxu0 %v52_v3 }
  0x13   :  { %128 = vmatmul.msk.f32.vlgmr.msra.gmra.mxu0 %vm56_vm0, %v51_v4 }
  0x90   :  { %v77_v6 = vpop.f32.mrf.mxu0 }
  0x91   :  { %v90_v7 = vadd.f32 %v135_v5, %v77_v6 }
  0x93   :  { %v91_v8 = vsub.f32 0.0, %v90_v7 }
  0x95   :  { %v92_v9 = vmul.f32 1.442695, %v91_v8 }
  0x97   :  { %136 = vpow2.f32 %v92_v9 }
  0x9d   :  { %v137_v10 = vpop.eup %136 }
  0x9e   :  { %v94_v11 = vadd.f32 1.0, %v137_v10 }
  0xa0   :  { %138 = vrcp.f32 %v94_v11  ;;  %v106_v15 = vand.u32 2147483648, %v94_v11  ;;  %v104_v17 = vand.u32 2147483647, %v94_v11  ;;  %vm100_vm2 = vweird.f32 %v94_v11 }
  0xa2   :  { %v107_v19 = vor.u32 1.1754944e-38, %v106_v15  ;;  %vm105_vm4 = vcmp.eq.f32.partialorder %v104_v17, 8.507059e+37 }
  0xa6   :  { %v139_v12 = vpop.eup %138 }
  0xa7   :  { %v96_v13 = vmul.f32 %v139_v12, %v94_v11  ;;  %vm101_vm1 = vweird.f32 %v139_v12 }
  0xa8   :  { %vm102_vm3 = vmor %vm100_vm2, %vm101_vm1 }
  0xa9   :  { %v97_v14 = vsub.f32 1.0, %v96_v13 }
  0xab   :  { %v98_v16 = vmul.f32 %v139_v12, %v97_v14 }
  0xad   :  { %v99_v18 = vadd.f32 %v139_v12, %v98_v16 }
  0xaf   :  { %v103_v20 = vsel %vm102_vm3, %v139_v12, %v99_v18 }
  0xb0   :  { %v108_v21 = vsel %vm105_vm4, %v107_v19, %v103_v20 }
  0xb1   :  { %109 = vst [vmem:[#allocation7] sm:$0xff] %v108_v21 }
  0xb2   :  { %120 = dma.vmem_to_hbm [thread:$0]  %s116_s25, 128, %s118_s2, [#allocation4]  }
  0xb3   :  { %216 = dma.done.wait [#allocation4], 128  }
  0xb4   :  { %217 = vsyncadd [#allocation4], 4294967168 }
  0xb5   :  { %125 = vsyncpa [#allocation3], 1 }
  0xb6   :  { %126 = vsyncpa [#allocation6], 1 }
  0xb7   :  { %127 = vsyncpa [#allocation4], 1 }

</bundles_post_ra>
